<compile_context>
chip_gen: v7x
topology: tpu7x:2x2x1
jax: 0.10.0
libtpu: 0.0.40
codegen_flags: <defaults>
</compile_context>

<pallas_src>
import jax
import jax.numpy as jnp
from jax.experimental import pallas as pl
from jax.experimental.pallas import tpu as pltpu


def _orthogonal(key, rows, cols, dtype=jnp.float32):
    """Deterministic orthogonal init (gain=1), like torch.nn.init.orthogonal_."""
    n = max(rows, cols)
    a = jax.random.normal(key, (n, n), dtype=jnp.float32)
    q, r = jnp.linalg.qr(a)
    # Sign correction so the decomposition is unique/deterministic.
    q = q * jnp.sign(jnp.diag(r))[None, :]
    return q[:rows, :cols].astype(dtype)


def _round_up(v, m):
    return ((v + m - 1) // m) * m


def _actor_base_kernel(x_ref, w1_ref, b1_ref, w2_ref, b2_ref, o_ref):
    cd = w1_ref.dtype
    # In-kernel cast of the batch tile (no-op when dtypes already match).
    x = x_ref[...].astype(cd)
    # Layer 1: MXU matmul with f32 accumulation, f32 bias add, tanh on EUP.
    h = jnp.dot(x, w1_ref[...], preferred_element_type=jnp.float32)
    h = jnp.tanh(h + b1_ref[...])
    # Layer 2.
    y = jnp.dot(h.astype(cd), w2_ref[...], preferred_element_type=jnp.float32)
    y = jnp.tanh(y + b2_ref[...])
    o_ref[...] = y.astype(o_ref.dtype)


def prepare_actor_base_params(w1, b1, w2, b2, compute_dtype=jnp.float32):
    """One-time parameter prep (cast weights, shape biases). Cache the result.

    w1: [input_dim, hidden_dim]   b1: [hidden_dim] or [1, hidden_dim]
    w2: [hidden_dim, hidden_dim]  b2: [hidden_dim] or [1, hidden_dim]
    """
    hidden = w1.shape[1]
    return (
        w1.astype(compute_dtype),
        jnp.reshape(b1, (1, hidden)).astype(jnp.float32),
        w2.astype(compute_dtype),
        jnp.reshape(b2, (1, hidden)).astype(jnp.float32),
    )


def svpg_particle_actor_base(x, params, *, out_dtype=None, block_batch=None,
                             vmem_budget_bytes=32 * 1024 * 1024,
                             min_grid_steps=2):
    """Fused MLP forward: tanh(tanh(x @ w1 + b1) @ w2 + b2).

    x:      [B, input_dim], native dtype (cast to compute dtype inside kernel)
    params: output of prepare_actor_base_params (w1, b1, w2, b2)
    returns [B, hidden_dim] in `out_dtype` (default: x.dtype)
    """
    w1, b1, w2, b2 = params
    B, in_dim = x.shape
    hidden = w1.shape[1]
    compute_dtype = w1.dtype
    out_dtype = x.dtype if out_dtype is None else out_dtype

    x_item = jnp.dtype(x.dtype).itemsize
    cd_item = jnp.dtype(compute_dtype).itemsize
    out_item = jnp.dtype(out_dtype).itemsize

    # ---- Batch tile from an explicit VMEM budget --------------------------
    # Per-row VMEM footprint per grid step: double-buffered x/out tiles plus
    # f32 intermediates (h, y) and the compute-dtype casts.
    per_row = (2 * in_dim * x_item        # x tile, double buffered
               + 2 * hidden * out_item    # out tile, double buffered
               + 2 * hidden * 4           # h, y f32 intermediates
               + hidden * cd_item         # h cast for second matmul
               + in_dim * cd_item)        # x cast
    # Resident weights/biases (default pipelining keeps two copies).
    weight_bytes = 2 * ((in_dim * hidden + hidden * hidden) * cd_item
                        + 2 * hidden * 4)
    # Leave ~50% headroom for compiler scratch / regalloc.
    avail = max(vmem_budget_bytes // 2 - weight_bytes, 8 * per_row)
    tb = max(8, (avail // per_row // 8) * 8)
    if block_batch is not None:
        tb = min(tb, max(8, (block_batch // 8) * 8))
    # Guarantee >= min_grid_steps grid steps (megacore sharding on v7x and
    # DMA/compute overlap) whenever B allows it, at 8-row sublane granularity.
    steps_cap = _round_up(pl.cdiv(B, max(min_grid_steps, 1)), 8)
    tb = min(tb, steps_cap)
    tb = max(8, min(tb, _round_up(B, 8)))
    grid = (pl.cdiv(B, tb),)

    # ---- Cost hint ---------------------------------------------------------
    flops = 2 * B * (in_dim * hidden + hidden * hidden)
    bytes_accessed = (B * in_dim * x_item
                      + (in_dim * hidden + hidden * hidden) * cd_item
                      + 2 * hidden * 4
                      + B * hidden * out_item)
    cost = pl.CostEstimate(flops=flops,
                           transcendentals=2 * B * hidden,
                           bytes_accessed=bytes_accessed)

    return pl.pallas_call(
        _actor_base_kernel,
        out_shape=jax.ShapeDtypeStruct((B, hidden), out_dtype),
        grid_spec=pltpu.PrefetchScalarGridSpec(
            num_scalar_prefetch=0,
            grid=grid,
            in_specs=[
                pl.BlockSpec((tb, in_dim), lambda i: (i, 0)),       # x tile
                pl.BlockSpec((in_dim, hidden), lambda i: (0, 0)),   # w1 resident
                pl.BlockSpec((1, hidden), lambda i: (0, 0)),        # b1 resident
                pl.BlockSpec((hidden, hidden), lambda i: (0, 0)),   # w2 resident
                pl.BlockSpec((1, hidden), lambda i: (0, 0)),        # b2 resident
            ],
            out_specs=pl.BlockSpec((tb, hidden), lambda i: (i, 0)),
        ),
        compiler_params=pltpu.CompilerParams(
            dimension_semantics=("parallel",),
            vmem_limit_bytes=int(vmem_budget_bytes),
        ),
        cost_estimate=cost,
    )(x, w1, b1, w2, b2)


def _ref_mlp(x, w1, b1, w2, b2, compute_dtype=jnp.float32):
    """Pure-JAX reference mirroring the kernel's dtype handling."""
    cd = compute_dtype
    b1 = jnp.reshape(b1, (1, -1)).astype(jnp.float32)
    b2 = jnp.reshape(b2, (1, -1)).astype(jnp.float32)
    h = jnp.tanh(jnp.dot(x.astype(cd), w1.astype(cd),
                         preferred_element_type=jnp.float32) + b1)
    y = jnp.tanh(jnp.dot(h.astype(cd), w2.astype(cd),
                         preferred_element_type=jnp.float32) + b2)
    return y.astype(x.dtype)


if __name__ == "__main__":
    key = jax.random.PRNGKey(0)
    k_x, k_w1, k_w2 = jax.random.split(key, 3)

    batch = 512
    input_dim = 16
    hidden_dim = 32

    x = jax.random.normal(k_x, (batch, input_dim), dtype=jnp.float32)

    # Deterministic orthogonal weights, zero biases (as orthogonal_init does).
    w1 = _orthogonal(k_w1, input_dim, hidden_dim)   # [in, hidden]
    b1 = jnp.zeros((1, hidden_dim), dtype=jnp.float32)
    w2 = _orthogonal(k_w2, hidden_dim, hidden_dim)  # [hidden, hidden]
    b2 = jnp.zeros((1, hidden_dim), dtype=jnp.float32)

    # f32 compute path; default VMEM-budgeted tiling (>= 2 grid steps).
    params_f32 = prepare_actor_base_params(w1, b1, w2, b2,
                                           compute_dtype=jnp.float32)
    out_f32 = svpg_particle_actor_base(x, params_f32)
    out_f32 = jax.block_until_ready(out_f32)
    ref_f32 = _ref_mlp(x, w1, b1, w2, b2, compute_dtype=jnp.float32)
    assert out_f32.shape == (batch, hidden_dim)
    assert jnp.allclose(out_f32, ref_f32, atol=1e-5, rtol=1e-5), \
        "f32 mismatch vs reference"

    # bf16 compute path (recommended on v6e/v7x): bf16 matmul inputs,
    # f32 accumulation + epilogue.  Also exercises a 4-step grid.
    params_bf16 = prepare_actor_base_params(w1, b1, w2, b2,
                                            compute_dtype=jnp.bfloat16)
    out_bf16 = svpg_particle_actor_base(x, params_bf16, min_grid_steps=4)
    out_bf16 = jax.block_until_ready(out_bf16)
    ref_bf16 = _ref_mlp(x, w1, b1, w2, b2, compute_dtype=jnp.bfloat16)
    assert jnp.allclose(out_bf16, ref_bf16, atol=2e-3, rtol=2e-3), \
        "bf16 mismatch vs bf16 reference"

    print("KERNEL_OK")
</pallas_src>

<mosaic_0001>
module attributes {stable_mosaic.version = 11 : i64} {
  func.func @_actor_base_kernel(%arg0: i32, %arg1: memref<256x16xf32, #tpu.memory_space<vmem>>, %arg2: memref<16x32xf32, #tpu.memory_space<vmem>>, %arg3: memref<1x32xf32, #tpu.memory_space<vmem>>, %arg4: memref<32x32xf32, #tpu.memory_space<vmem>>, %arg5: memref<1x32xf32, #tpu.memory_space<vmem>>, %arg6: memref<256x32xf32, #tpu.memory_space<vmem>>) attributes {dimension_semantics = [#tpu.dimension_semantics<parallel>], iteration_bounds = array<i64: 2>, scalar_prefetch = 0 : i64, scratch_operands = 0 : i64, tpu.core_type = #tpu.core_type<tc>, window_params = [{transform_indices = @transform_0, window_bounds = array<i64: 256, 16>}, {pipeline_mode = #tpu.pipeline_mode<synchronous>, transform_indices = @transform_1, window_bounds = array<i64: 16, 32>}, {pipeline_mode = #tpu.pipeline_mode<synchronous>, transform_indices = @transform_2, window_bounds = array<i64: 1, 32>}, {pipeline_mode = #tpu.pipeline_mode<synchronous>, transform_indices = @transform_3, window_bounds = array<i64: 32, 32>}, {pipeline_mode = #tpu.pipeline_mode<synchronous>, transform_indices = @transform_4, window_bounds = array<i64: 1, 32>}, {transform_indices = @transform_5, window_bounds = array<i64: 256, 32>}]} {
    %c0 = arith.constant 0 : index
    %c0_0 = arith.constant 0 : index
    %0 = vector.load %arg1[%c0, %c0_0] : memref<256x16xf32, #tpu.memory_space<vmem>>, vector<256x16xf32>
    %c0_1 = arith.constant 0 : index
    %c0_2 = arith.constant 0 : index
    %1 = vector.load %arg2[%c0_1, %c0_2] : memref<16x32xf32, #tpu.memory_space<vmem>>, vector<16x32xf32>
    %cst = arith.constant dense<0.000000e+00> : vector<256x32xf32>
    %2 = tpu.matmul %0, %1, %cst {dimension_numbers = #tpu.dot_dimension_numbers<[1], [0], [0], [1], [0, 0, 1, 1], [], []>} : vector<256x16xf32>, vector<16x32xf32>, vector<256x32xf32> -> vector<256x32xf32>
    %c0_3 = arith.constant 0 : index
    %c0_4 = arith.constant 0 : index
    %3 = vector.load %arg3[%c0_3, %c0_4] : memref<1x32xf32, #tpu.memory_space<vmem>>, vector<1x32xf32>
    %4 = vector.broadcast %3 : vector<1x32xf32> to vector<256x32xf32>
    %5 = arith.addf %2, %4 : vector<256x32xf32>
    %6 = math.tanh %5 : vector<256x32xf32>
    %c0_5 = arith.constant 0 : index
    %c0_6 = arith.constant 0 : index
    %7 = vector.load %arg4[%c0_5, %c0_6] : memref<32x32xf32, #tpu.memory_space<vmem>>, vector<32x32xf32>
    %cst_7 = arith.constant dense<0.000000e+00> : vector<256x32xf32>
    %8 = tpu.matmul %6, %7, %cst_7 {dimension_numbers = #tpu.dot_dimension_numbers<[1], [0], [0], [1], [0, 0, 1, 1], [], []>} : vector<256x32xf32>, vector<32x32xf32>, vector<256x32xf32> -> vector<256x32xf32>
    %c0_8 = arith.constant 0 : index
    %c0_9 = arith.constant 0 : index
    %9 = vector.load %arg5[%c0_8, %c0_9] : memref<1x32xf32, #tpu.memory_space<vmem>>, vector<1x32xf32>
    %10 = vector.broadcast %9 : vector<1x32xf32> to vector<256x32xf32>
    %11 = arith.addf %8, %10 : vector<256x32xf32>
    %12 = math.tanh %11 : vector<256x32xf32>
    %c0_10 = arith.constant 0 : index
    %c0_11 = arith.constant 0 : index
    %13 = vector.load %arg6[%c0_10, %c0_11] : memref<256x32xf32, #tpu.memory_space<vmem>>, vector<256x32xf32>
    tpu.vector_store %arg6[%c0_10, %c0_11], %12 {strides = array<i32>} : memref<256x32xf32, #tpu.memory_space<vmem>>, vector<256x32xf32>,
    return
  }
  func.func @transform_0(%arg0: i32) -> (i32, i32) {
    %c0_i32 = arith.constant 0 : i32
    %c0_i32_0 = arith.constant 0 : i32
    return %arg0, %c0_i32 : i32, i32
  }
  func.func @transform_1(%arg0: i32) -> (i32, i32) {
    %c0_i32 = arith.constant 0 : i32
    %c0_i32_0 = arith.constant 0 : i32
    %c0_i32_1 = arith.constant 0 : i32
    return %c0_i32, %c0_i32_0 : i32, i32
  }
  func.func @transform_2(%arg0: i32) -> (i32, i32) {
    %c0_i32 = arith.constant 0 : i32
    %c0_i32_0 = arith.constant 0 : i32
    %c0_i32_1 = arith.constant 0 : i32
    return %c0_i32, %c0_i32_0 : i32, i32
  }
  func.func @transform_3(%arg0: i32) -> (i32, i32) {
    %c0_i32 = arith.constant 0 : i32
    %c0_i32_0 = arith.constant 0 : i32
    %c0_i32_1 = arith.constant 0 : i32
    return %c0_i32, %c0_i32_0 : i32, i32
  }
  func.func @transform_4(%arg0: i32) -> (i32, i32) {
    %c0_i32 = arith.constant 0 : i32
    %c0_i32_0 = arith.constant 0 : i32
    %c0_i32_1 = arith.constant 0 : i32
    return %c0_i32, %c0_i32_0 : i32, i32
  }
  func.func @transform_5(%arg0: i32) -> (i32, i32) {
    %c0_i32 = arith.constant 0 : i32
    %c0_i32_0 = arith.constant 0 : i32
    return %arg0, %c0_i32 : i32, i32
  }
}

</mosaic_0001>

<bundles_post_ra>
// kernel: tpu_custom_call.1
= control target key start
LH: loop header
LB: loop body
LE: loop exit
PB: predicated region body
PF: predicated region fallthrough
CT: control target
= control target key end

     0   :  { %s1517_s18 = smov 0   ;;  %s1797_s0 = inlined_call_operand.vmem [shape: f32[512,16], index: 0, kind: input, shape index: {}]   ;;  %s1798_s1 = inlined_call_operand.vmem [shape: f32[16,32], index: 1, kind: input, shape index: {}]   ;;  %s1799_s2 = inlined_call_operand.vmem [shape: f32[1,32], index: 2, kind: input, shape index: {}]   ;;  %s1800_s3 = inlined_call_operand.vmem [shape: f32[32,32], index: 3, kind: input, shape index: {}]   ;;  %s1801_s4 = inlined_call_operand.vmem [shape: f32[1,32], index: 4, kind: input, shape index: {}]   ;;  %s1802_s5 = inlined_call_operand.vmem [shape: f32[512,32], index: 5, kind: output, shape index: {}]  }
   0x1 LB: > { %s1076_s19 = sadd.s32 4294967295, %s1485_s18   ;;  %p1080_p0 = scmp.ge.s32.totalorder %s1485_s18, 1  ;;  %s1485_s18 = sphi %s1517_s18, %s15_s18  }
   0x2   : > { %p188_p1 = scmp.lt.s32.totalorder %s1485_s18, 3 }
   0x4   : > { %p189_p2 = pnand %p1080_p0, %p188_p1 }
   0x5   : > { %v260_v0 = vld [vmem:[%s1798_s1] sm:$0xff] (!%p189_p2)  ;;  %v261_v1 = vld [vmem:[%s1798_s1 + $0x8] sm:$0xff] (!%p189_p2)  ;;  %s1081_s24 = sshll.u32 (!%p189_p2), %s1076_s19, 5  ;;  %vm269_vm0 = vcmask (!%p189_p2), 130048   ;;  %v625_v38 = vld [vmem:[%s1800_s3 + $0x10] sm:$0xff] (!%p189_p2)  ;;  %vm634_vm1 = vcmask (!%p189_p2), 261120  }
   0x6   : > { %192 = sbr.rel (%p189_p2) target bundleno = 532 (0x214), region = 40  ;;  %v1331_v2 = vpack.c.bf16 (!%p189_p2), %v261_v1, %v260_v0  ;;  %p217_p3 = scmp.lt.s32.totalorder (!%p189_p2), %s1081_s24, 63  ;;  %v623_v35 = vld [vmem:[%s1800_s3] sm:$0xff] (!%p189_p2)  ;;  %v624_v36 = vld [vmem:[%s1800_s3 + $0x8] sm:$0xff] (!%p189_p2)  ;;  %v626_v39 = vld [vmem:[%s1800_s3 + $0x18] sm:$0xff] (!%p189_p2) }
   0x7   : > { %v1335_v37 = vpack.c.bf16 (!%p189_p2), %v624_v36, %v623_v35  ;;  %v1339_v40 = vpack.c.bf16 (!%p189_p2), %v626_v39, %v625_v38  ;;  %v1620_v41 = vld [vmem:[%s1799_s2] ss:$0 sm:$0xff] (!%p189_p2) }
   0x8   : > { %1332 = vmatprep.subr.bf16.mxu0 (!%p189_p2), %v1331_v2 }
   0x9   : > { %1334 = vmatpush3.bf16.msra.mxu0 (!%p189_p2), %v1331_v2  ;;  %1336 = vmatprep.subr.bf16.mxu1 (!%p189_p2), %v1335_v37 }
   0xa   : > { %1338 = vmatpush3.bf16.msra.mxu1 (!%p189_p2), %v1335_v37 }
   0xb   : > { %1340 = vmatprep.subr.bf16.mxu1 (!%p189_p2), %v1339_v40 }
   0xd   : > { %s1804_s24 = smov (!%p217_p3, %s1081_s24), 63 }
   0xe   : > { %s1082_s25 = sshll.u32 %s1804_s24, 3  ;;  %1342 = vmatpush3.bf16.msra.mxu1 %v1339_v40 }
   0xf   : > { %s1539_s28 = scalar_lea.vmem %s1797_s0, %s1082_s25  ;;  %s1702_s19 = scalar_lea.vmem %s1802_s5, %s1082_s25 }
  0x10   : > { %v228_v3 = vld [vmem:[%s1539_s28] sm:$0xff]  ;;  %v229_v4 = vld [vmem:[%s1539_s28 + $0x8] sm:$0xff]  ;;  %v230_v5 = vld [vmem:[%s1539_s28 + $0x10] sm:$0xff] }
  0x11   : > { %1227 = vmatprep.mubr.msk.f32.mxu0 %vm269_vm0, %v228_v3  ;;  %v231_v6 = vld [vmem:[%s1539_s28 + $0x18] sm:$0xff]  ;;  %v232_v7 = vld [vmem:[%s1539_s28 + $0x20] sm:$0xff]  ;;  %v233_v8 = vld [vmem:[%s1539_s28 + $0x28] sm:$0xff] }
  0x12   : > { %1228 = vmatmul.mubr.msk.f32.vlgmr.msra.gmra.mrb[0].mxu0 %vm269_vm0, %v229_v4  ;;  %v234_v9 = vld [vmem:[%s1539_s28 + $0x30] sm:$0xff]  ;;  %v235_v10 = vld [vmem:[%s1539_s28 + $0x38] sm:$0xff]  ;;  %v236_v11 = vld [vmem:[%s1539_s28 + $0x40] sm:$0xff] }
  0x13   : > { %1230 = vmatprep.mubr.msk.f32.mxu0 %vm269_vm0, %v230_v5  ;;  %v237_v12 = vld [vmem:[%s1539_s28 + $0x48] sm:$0xff]  ;;  %v238_v13 = vld [vmem:[%s1539_s28 + $0x50] sm:$0xff]  ;;  %v239_v14 = vld [vmem:[%s1539_s28 + $0x58] sm:$0xff] }
  0x14   : > { %v240_v15 = vld [vmem:[%s1539_s28 + $0x60] sm:$0xff]  ;;  %v241_v16 = vld [vmem:[%s1539_s28 + $0x68] sm:$0xff]  ;;  %v242_v17 = vld [vmem:[%s1539_s28 + $0x70] sm:$0xff] }
  0x15   : > { %v243_v18 = vld [vmem:[%s1539_s28 + $0x78] sm:$0xff]  ;;  %v244_v19 = vld [vmem:[%s1539_s28 + $0x80] sm:$0xff]  ;;  %v245_v20 = vld [vmem:[%s1539_s28 + $0x88] sm:$0xff] }
  0x16   : > { %1231 = vmatmul.mubr.msk.f32.gmra.mrb[2].mxu0 %vm269_vm0, %v231_v6  ;;  %v246_v21 = vld [vmem:[%s1539_s28 + $0x90] sm:$0xff]  ;;  %v247_v22 = vld [vmem:[%s1539_s28 + $0x98] sm:$0xff]  ;;  %v248_v23 = vld [vmem:[%s1539_s28 + $0xa0] sm:$0xff] }
  0x17   : > { %1233 = vmatprep.mubr.msk.f32.mxu0 %vm269_vm0, %v232_v7  ;;  %v249_v24 = vld [vmem:[%s1539_s28 + $0xa8] sm:$0xff]  ;;  %v250_v25 = vld [vmem:[%s1539_s28 + $0xb0] sm:$0xff]  ;;  %v251_v26 = vld [vmem:[%s1539_s28 + $0xb8] sm:$0xff] }
  0x18   : > { %v252_v27 = vld [vmem:[%s1539_s28 + $0xc0] sm:$0xff]  ;;  %v253_v28 = vld [vmem:[%s1539_s28 + $0xc8] sm:$0xff]  ;;  %v254_v29 = vld [vmem:[%s1539_s28 + $0xd0] sm:$0xff] }
  0x19   : > { %v255_v30 = vld [vmem:[%s1539_s28 + $0xd8] sm:$0xff]  ;;  %v256_v31 = vld [vmem:[%s1539_s28 + $0xe0] sm:$0xff]  ;;  %v257_v32 = vld [vmem:[%s1539_s28 + $0xe8] sm:$0xff] }
  0x1a   : > { %1234 = vmatmul.mubr.msk.f32.gmra.mrb[4].mxu0 %vm269_vm0, %v233_v8  ;;  %v258_v33 = vld [vmem:[%s1539_s28 + $0xf0] sm:$0xff]  ;;  %v259_v34 = vld [vmem:[%s1539_s28 + $0xf8] sm:$0xff] }
  0x1b   : > { %1236 = vmatprep.mubr.msk.f32.mxu0 %vm269_vm0, %v234_v9 }
  0x1e   : > { %1237 = vmatmul.mubr.msk.f32.gmra.mrb[6].mxu0 %vm269_vm0, %v235_v10 }
  0x1f   : > { %1239 = vmatprep.mubr.msk.f32.mxu0 %vm269_vm0, %v236_v11 }
  0x22   : > { %1240 = vmatmul.mubr.msk.f32.gmra.mrb[8].mxu0 %vm269_vm0, %v237_v12 }
  0x23   : > { %1242 = vmatprep.mubr.msk.f32.mxu0 %vm269_vm0, %v238_v13 }
  0x26   : > { %1243 = vmatmul.mubr.msk.f32.gmra.mrb[10].mxu0 %vm269_vm0, %v239_v14 }
  0x27   : > { %1245 = vmatprep.mubr.msk.f32.mxu0 %vm269_vm0, %v240_v15 }
  0x2a   : > { %1246 = vmatmul.mubr.msk.f32.gmra.mrb[12].mxu0 %vm269_vm0, %v241_v16 }
  0x2b   : > { %1248 = vmatprep.mubr.msk.f32.mxu0 %vm269_vm0, %v242_v17 }
  0x2e   : > { %1249 = vmatmul.mubr.msk.f32.gmra.mrb[14].mxu0 %vm269_vm0, %v243_v18 }
  0x2f   : > { %1251 = vmatprep.mubr.msk.f32.mxu0 %vm269_vm0, %v244_v19 }
  0x32   : > { %1252 = vmatmul.mubr.msk.f32.gmra.mrb[16].mxu0 %vm269_vm0, %v245_v20 }
  0x33   : > { %1254 = vmatprep.mubr.msk.f32.mxu0 %vm269_vm0, %v246_v21 }
  0x36   : > { %1255 = vmatmul.mubr.msk.f32.gmra.mrb[18].mxu0 %vm269_vm0, %v247_v22 }
  0x37   : > { %1257 = vmatprep.mubr.msk.f32.mxu0 %vm269_vm0, %v248_v23 }
  0x3a   : > { %1258 = vmatmul.mubr.msk.f32.gmra.mrb[20].mxu0 %vm269_vm0, %v249_v24 }
  0x3b   : > { %1260 = vmatprep.mubr.msk.f32.mxu0 %vm269_vm0, %v250_v25 }
  0x3e   : > { %1261 = vmatmul.mubr.msk.f32.gmra.mrb[22].mxu0 %vm269_vm0, %v251_v26 }
  0x3f   : > { %1263 = vmatprep.mubr.msk.f32.mxu0 %vm269_vm0, %v252_v27 }
  0x42   : > { %1264 = vmatmul.mubr.msk.f32.gmra.mrb[24].mxu0 %vm269_vm0, %v253_v28 }
  0x43   : > { %1266 = vmatprep.mubr.msk.f32.mxu0 %vm269_vm0, %v254_v29 }
  0x46   : > { %1267 = vmatmul.mubr.msk.f32.gmra.mrb[26].mxu0 %vm269_vm0, %v255_v30 }
  0x47   : > { %1269 = vmatprep.mubr.msk.f32.mxu0 %vm269_vm0, %v256_v31 }
  0x4a   : > { %1270 = vmatmul.mubr.msk.f32.gmra.mrb[28].mxu0 %vm269_vm0, %v257_v32 }
  0x4b   : > { %1272 = vmatprep.mubr.msk.f32.mxu0 %vm269_vm0, %v258_v33 }
  0x4e   : > { %1273 = vmatmul.mubr.msk.f32.gmra.mrb[30].mxu0 %vm269_vm0, %v259_v34 }
  0xe5   : > { %v1229_v42 = vpop.f32.mrb[0].mxu0 }
  0xe6   : > { %v438_v43 = vadd.f32 %v1229_v42, %v1620_v41  ;;  %v432_v44 = vpop.f32.mrb[1].mxu0 }
  0xe7   : > { %v433_v45 = vadd.f32 %v1620_v41, %v432_v44 }
  0xe9   : > { %1351 = vtanh.f32 %v433_v45  ;;  %v1232_v46 = vpop.f32.mrb[2].mxu0 }
  0xea   : > { %1353 = vtanh.f32 %v438_v43  ;;  %v448_v47 = vadd.f32 %v1232_v46, %v1620_v41  ;;  %v442_v48 = vpop.f32.mrb[3].mxu0 }
  0xeb   : > { %v443_v49 = vadd.f32 %v1620_v41, %v442_v48 }
  0xed   : > { %1355 = vtanh.f32 %v443_v49  ;;  %v1235_v50 = vpop.f32.mrb[4].mxu0 }
  0xee   : > { %1357 = vtanh.f32 %v448_v47  ;;  %v458_v51 = vadd.f32 %v1235_v50, %v1620_v41  ;;  %v452_v52 = vpop.f32.mrb[5].mxu0 }
  0xef   : > { %v453_v53 = vadd.f32 %v1620_v41, %v452_v52 }
  0xf1   : > { %1359 = vtanh.f32 %v453_v53  ;;  %v1238_v54 = vpop.f32.mrb[6].mxu0 }
  0xf2   : > { %1361 = vtanh.f32 %v458_v51  ;;  %v468_v55 = vadd.f32 %v1238_v54, %v1620_v41  ;;  %v462_v56 = vpop.f32.mrb[7].mxu0 }
  0xf3   : > { %v1352_v57 = vpop.eup %1351  ;;  %v463_v58 = vadd.f32 %v1620_v41, %v462_v56 }
  0xf4   : > { %v1354_v59 = vpop.eup %1353  ;;  %1283 = vmatprep.mubr.msk.f32.mxu1 %vm634_vm1, %v1352_v57 }
  0xf5   : > { %1363 = vtanh.f32 %v463_v58  ;;  %v1241_v60 = vpop.f32.mrb[8].mxu0  ;;  %1284 = vmatmul.mubr.msk.f32.vlgmr.msra.gmra.mrb[0].mxu1 %vm634_vm1, %v1354_v59 }
  0xf6   : > { %1365 = vtanh.f32 %v468_v55  ;;  %v478_v61 = vadd.f32 %v1241_v60, %v1620_v41  ;;  %v472_v62 = vpop.f32.mrb[9].mxu0 }
  0xf7   : > { %v1356_v63 = vpop.eup %1355  ;;  %v473_v0 = vadd.f32 %v1620_v41, %v472_v62 }
  0xf8   : > { %v1358_v1 = vpop.eup %1357  ;;  %1286 = vmatprep.mubr.msk.f32.mxu1 %vm634_vm1, %v1356_v63 }
  0xf9   : > { %1367 = vtanh.f32 %v473_v0  ;;  %v1244_v2 = vpop.f32.mrb[10].mxu0  ;;  %1287 = vmatmul.mubr.msk.f32.gmra.mrb[2].mxu1 %vm634_vm1, %v1358_v1 }
  0xfa   : > { %1369 = vtanh.f32 %v478_v61  ;;  %v488_v3 = vadd.f32 %v1244_v2, %v1620_v41  ;;  %v482_v4 = vpop.f32.mrb[11].mxu0 }
  0xfb   : > { %v1360_v5 = vpop.eup %1359  ;;  %v483_v6 = vadd.f32 %v1620_v41, %v482_v4 }
  0xfc   : > { %v1362_v7 = vpop.eup %1361  ;;  %1289 = vmatprep.mubr.msk.f32.mxu1 %vm634_vm1, %v1360_v5 }
  0xfd   : > { %1371 = vtanh.f32 %v483_v6  ;;  %v1247_v8 = vpop.f32.mrb[12].mxu0  ;;  %1290 = vmatmul.mubr.msk.f32.gmra.mrb[4].mxu1 %vm634_vm1, %v1362_v7 }
  0xfe   : > { %1373 = vtanh.f32 %v488_v3  ;;  %v498_v9 = vadd.f32 %v1247_v8, %v1620_v41  ;;  %v492_v10 = vpop.f32.mrb[13].mxu0 }
  0xff   : > { %v1364_v11 = vpop.eup %1363  ;;  %v493_v12 = vadd.f32 %v1620_v41, %v492_v10  ;;  %v1689_v10 = vld [vmem:[%s1801_s4] ss:$0 sm:$0xff] }
 0x100   : > { %v1366_v13 = vpop.eup %1365  ;;  %1292 = vmatprep.mubr.msk.f32.mxu1 %vm634_vm1, %v1364_v11 }
 0x101   : > { %1375 = vtanh.f32 %v493_v12  ;;  %v1250_v14 = vpop.f32.mrb[14].mxu0  ;;  %1293 = vmatmul.mubr.msk.f32.gmra.mrb[6].mxu1 %vm634_vm1, %v1366_v13 }
 0x102   : > { %1377 = vtanh.f32 %v498_v9  ;;  %v508_v15 = vadd.f32 %v1250_v14, %v1620_v41  ;;  %v502_v16 = vpop.f32.mrb[15].mxu0 }
 0x103   : > { %v1368_v17 = vpop.eup %1367  ;;  %v503_v18 = vadd.f32 %v1620_v41, %v502_v16 }
 0x104   : > { %v1370_v19 = vpop.eup %1369  ;;  %1295 = vmatprep.mubr.msk.f32.mxu1 %vm634_vm1, %v1368_v17 }
 0x105   : > { %1379 = vtanh.f32 %v503_v18  ;;  %v1253_v20 = vpop.f32.mrb[16].mxu0  ;;  %1296 = vmatmul.mubr.msk.f32.gmra.mrb[8].mxu1 %vm634_vm1, %v1370_v19 }
 0x106   : > { %1381 = vtanh.f32 %v508_v15  ;;  %v518_v21 = vadd.f32 %v1253_v20, %v1620_v41  ;;  %v512_v22 = vpop.f32.mrb[17].mxu0 }
 0x107   : > { %v1372_v23 = vpop.eup %1371  ;;  %v513_v24 = vadd.f32 %v1620_v41, %v512_v22 }
 0x108   : > { %v1374_v25 = vpop.eup %1373  ;;  %1298 = vmatprep.mubr.msk.f32.mxu1 %vm634_vm1, %v1372_v23 }
 0x109   : > { %1383 = vtanh.f32 %v513_v24  ;;  %v1256_v26 = vpop.f32.mrb[18].mxu0  ;;  %1299 = vmatmul.mubr.msk.f32.gmra.mrb[10].mxu1 %vm634_vm1, %v1374_v25 }
 0x10a   : > { %1385 = vtanh.f32 %v518_v21  ;;  %v528_v27 = vadd.f32 %v1256_v26, %v1620_v41  ;;  %v522_v28 = vpop.f32.mrb[19].mxu0 }
 0x10b   : > { %v1376_v29 = vpop.eup %1375  ;;  %v523_v30 = vadd.f32 %v1620_v41, %v522_v28 }
 0x10c   : > { %v1378_v31 = vpop.eup %1377  ;;  %1301 = vmatprep.mubr.msk.f32.mxu1 %vm634_vm1, %v1376_v29 }
 0x10d   : > { %1387 = vtanh.f32 %v523_v30  ;;  %v1259_v32 = vpop.f32.mrb[20].mxu0  ;;  %1302 = vmatmul.mubr.msk.f32.gmra.mrb[12].mxu1 %vm634_vm1, %v1378_v31 }
 0x10e   : > { %1389 = vtanh.f32 %v528_v27  ;;  %v538_v33 = vadd.f32 %v1259_v32, %v1620_v41  ;;  %v532_v34 = vpop.f32.mrb[21].mxu0 }
 0x10f   : > { %v1380_v35 = vpop.eup %1379  ;;  %v533_v36 = vadd.f32 %v1620_v41, %v532_v34 }
 0x110   : > { %v1382_v37 = vpop.eup %1381  ;;  %1304 = vmatprep.mubr.msk.f32.mxu1 %vm634_vm1, %v1380_v35 }
 0x111   : > { %1391 = vtanh.f32 %v533_v36  ;;  %v1262_v38 = vpop.f32.mrb[22].mxu0  ;;  %1305 = vmatmul.mubr.msk.f32.gmra.mrb[14].mxu1 %vm634_vm1, %v1382_v37 }
 0x112   : > { %1393 = vtanh.f32 %v538_v33  ;;  %v548_v39 = vadd.f32 %v1262_v38, %v1620_v41  ;;  %v542_v40 = vpop.f32.mrb[23].mxu0 }
 0x113   : > { %v1384_v42 = vpop.eup %1383  ;;  %v543_v43 = vadd.f32 %v1620_v41, %v542_v40 }
 0x114   : > { %v1386_v44 = vpop.eup %1385  ;;  %1307 = vmatprep.mubr.msk.f32.mxu1 %vm634_vm1, %v1384_v42 }
 0x115   : > { %1395 = vtanh.f32 %v543_v43  ;;  %v1265_v45 = vpop.f32.mrb[24].mxu0  ;;  %1308 = vmatmul.mubr.msk.f32.gmra.mrb[16].mxu1 %vm634_vm1, %v1386_v44 }
 0x116   : > { %1397 = vtanh.f32 %v548_v39  ;;  %v558_v46 = vadd.f32 %v1265_v45, %v1620_v41  ;;  %v552_v47 = vpop.f32.mrb[25].mxu0 }
 0x117   : > { %v1388_v48 = vpop.eup %1387  ;;  %v553_v49 = vadd.f32 %v1620_v41, %v552_v47 }
 0x118   : > { %v1390_v50 = vpop.eup %1389  ;;  %1310 = vmatprep.mubr.msk.f32.mxu1 %vm634_vm1, %v1388_v48 }
 0x119   : > { %1399 = vtanh.f32 %v553_v49  ;;  %v1268_v51 = vpop.f32.mrb[26].mxu0  ;;  %1311 = vmatmul.mubr.msk.f32.gmra.mrb[18].mxu1 %vm634_vm1, %v1390_v50 }
 0x11a   : > { %1401 = vtanh.f32 %v558_v46  ;;  %v568_v52 = vadd.f32 %v1268_v51, %v1620_v41  ;;  %v562_v53 = vpop.f32.mrb[27].mxu0 }
 0x11b   : > { %v1392_v54 = vpop.eup %1391  ;;  %v563_v55 = vadd.f32 %v1620_v41, %v562_v53 }
 0x11c   : > { %v1394_v56 = vpop.eup %1393  ;;  %1313 = vmatprep.mubr.msk.f32.mxu1 %vm634_vm1, %v1392_v54 }
 0x11d   : > { %1403 = vtanh.f32 %v563_v55  ;;  %v1271_v57 = vpop.f32.mrb[28].mxu0  ;;  %1314 = vmatmul.mubr.msk.f32.gmra.mrb[20].mxu1 %vm634_vm1, %v1394_v56 }
 0x11e   : > { %1405 = vtanh.f32 %v568_v52  ;;  %v578_v58 = vadd.f32 %v1271_v57, %v1620_v41  ;;  %v572_v59 = vpop.f32.mrb[29].mxu0 }
 0x11f   : > { %v1396_v60 = vpop.eup %1395  ;;  %v573_v61 = vadd.f32 %v1620_v41, %v572_v59 }
 0x120   : > { %v1398_v62 = vpop.eup %1397  ;;  %1316 = vmatprep.mubr.msk.f32.mxu1 %vm634_vm1, %v1396_v60 }
 0x121   : > { %1407 = vtanh.f32 %v573_v61  ;;  %v1274_v63 = vpop.f32.mrb[30].mxu0  ;;  %1317 = vmatmul.mubr.msk.f32.gmra.mrb[22].mxu1 %vm634_vm1, %v1398_v62 }
 0x122   : > { %1409 = vtanh.f32 %v578_v58  ;;  %v588_v0 = vadd.f32 %v1274_v63, %v1620_v41  ;;  %v582_v1 = vpop.f32.mrb[31].mxu0 }
 0x123   : > { %v1400_v2 = vpop.eup %1399  ;;  %v583_v3 = vadd.f32 %v1620_v41, %v582_v1 }
 0x124   : > { %v1402_v4 = vpop.eup %1401  ;;  %1319 = vmatprep.mubr.msk.f32.mxu1 %vm634_vm1, %v1400_v2 }
 0x125   : > { %1411 = vtanh.f32 %v583_v3  ;;  %1320 = vmatmul.mubr.msk.f32.gmra.mrb[24].mxu1 %vm634_vm1, %v1402_v4 }
 0x126   : > { %1413 = vtanh.f32 %v588_v0 }
 0x127   : > { %v1404_v5 = vpop.eup %1403 }
 0x128   : > { %v1406_v6 = vpop.eup %1405  ;;  %1322 = vmatprep.mubr.msk.f32.mxu1 %vm634_vm1, %v1404_v5 }
 0x129   : > { %1323 = vmatmul.mubr.msk.f32.gmra.mrb[26].mxu1 %vm634_vm1, %v1406_v6 }
 0x12b   : > { %v1408_v7 = vpop.eup %1407 }
 0x12c   : > { %v1410_v8 = vpop.eup %1409  ;;  %1325 = vmatprep.mubr.msk.f32.mxu1 %vm634_vm1, %v1408_v7 }
 0x12d   : > { %1326 = vmatmul.mubr.msk.f32.gmra.mrb[28].mxu1 %vm634_vm1, %v1410_v8 }
 0x12f   : > { %v1412_v41 = vpop.eup %1411 }
 0x130   : > { %v1414_v9 = vpop.eup %1413  ;;  %1328 = vmatprep.mubr.msk.f32.mxu1 %vm634_vm1, %v1412_v41 }
 0x131   : > { %1329 = vmatmul.mubr.msk.f32.gmra.mrb[30].mxu1 %vm634_vm1, %v1414_v9 }
 0x1c8   : > { %v1285_v11 = vpop.f32.mrb[0].mxu1 }
 0x1c9   : > { %v803_v12 = vadd.f32 %v1285_v11, %v1689_v10  ;;  %v797_v13 = vpop.f32.mrb[1].mxu1 }
 0x1ca   : > { %v798_v14 = vadd.f32 %v1689_v10, %v797_v13 }
 0x1cb   : > { %1415 = vtanh.f32 %v803_v12 }
 0x1cc   : > { %1417 = vtanh.f32 %v798_v14  ;;  %v1288_v15 = vpop.f32.mrb[2].mxu1 }
 0x1cd   : > { %v813_v16 = vadd.f32 %v1288_v15, %v1689_v10  ;;  %v807_v17 = vpop.f32.mrb[3].mxu1 }
 0x1ce   : > { %v808_v18 = vadd.f32 %v1689_v10, %v807_v17 }
 0x1cf   : > { %1419 = vtanh.f32 %v813_v16 }
 0x1d0   : > { %1421 = vtanh.f32 %v808_v18  ;;  %v1291_v19 = vpop.f32.mrb[4].mxu1 }
 0x1d1   : > { %v823_v20 = vadd.f32 %v1291_v19, %v1689_v10  ;;  %v817_v21 = vpop.f32.mrb[5].mxu1 }
 0x1d2   : > { %v818_v22 = vadd.f32 %v1689_v10, %v817_v21 }
 0x1d3   : > { %1423 = vtanh.f32 %v823_v20 }
 0x1d4   : > { %1425 = vtanh.f32 %v818_v22  ;;  %v1294_v23 = vpop.f32.mrb[6].mxu1 }
 0x1d5   : > { %v1416_v24 = vpop.eup %1415  ;;  %v833_v25 = vadd.f32 %v1294_v23, %v1689_v10  ;;  %v827_v26 = vpop.f32.mrb[7].mxu1 }
 0x1d6   : > { %v1418_v27 = vpop.eup %1417  ;;  %989 = vst.msk [vmem:[%s1702_s19 + $0x8] sm:$0xff] %vm634_vm1, %v1416_v24  ;;  %v828_v28 = vadd.f32 %v1689_v10, %v827_v26 }
 0x1d7   : > { %988 = vst.msk [vmem:[%s1702_s19] sm:$0xff] %vm634_vm1, %v1418_v27  ;;  %1427 = vtanh.f32 %v833_v25 }
 0x1d8   : > { %1429 = vtanh.f32 %v828_v28  ;;  %v1297_v29 = vpop.f32.mrb[8].mxu1 }
 0x1d9   : > { %v1420_v30 = vpop.eup %1419  ;;  %v843_v31 = vadd.f32 %v1297_v29, %v1689_v10  ;;  %v837_v32 = vpop.f32.mrb[9].mxu1 }
 0x1da   : > { %v1422_v33 = vpop.eup %1421  ;;  %991 = vst.msk [vmem:[%s1702_s19 + $0x18] sm:$0xff] %vm634_vm1, %v1420_v30  ;;  %v838_v34 = vadd.f32 %v1689_v10, %v837_v32 }
 0x1db   : > { %990 = vst.msk [vmem:[%s1702_s19 + $0x10] sm:$0xff] %vm634_vm1, %v1422_v33  ;;  %1431 = vtanh.f32 %v843_v31 }
 0x1dc   : > { %1433 = vtanh.f32 %v838_v34  ;;  %v1300_v35 = vpop.f32.mrb[10].mxu1 }
 0x1dd   : > { %v1424_v36 = vpop.eup %1423  ;;  %v853_v37 = vadd.f32 %v1300_v35, %v1689_v10  ;;  %v847_v38 = vpop.f32.mrb[11].mxu1 }
 0x1de   : > { %v1426_v39 = vpop.eup %1425  ;;  %993 = vst.msk [vmem:[%s1702_s19 + $0x28] sm:$0xff] %vm634_vm1, %v1424_v36  ;;  %v848_v40 = vadd.f32 %v1689_v10, %v847_v38 }
 0x1df   : > { %992 = vst.msk [vmem:[%s1702_s19 + $0x20] sm:$0xff] %vm634_vm1, %v1426_v39  ;;  %1435 = vtanh.f32 %v853_v37 }
 0x1e0   : > { %1437 = vtanh.f32 %v848_v40  ;;  %v1303_v42 = vpop.f32.mrb[12].mxu1 }
 0x1e1   : > { %v1428_v43 = vpop.eup %1427  ;;  %v863_v44 = vadd.f32 %v1303_v42, %v1689_v10  ;;  %v857_v45 = vpop.f32.mrb[13].mxu1 }
 0x1e2   : > { %v1430_v46 = vpop.eup %1429  ;;  %995 = vst.msk [vmem:[%s1702_s19 + $0x38] sm:$0xff] %vm634_vm1, %v1428_v43  ;;  %v858_v47 = vadd.f32 %v1689_v10, %v857_v45 }
 0x1e3   : > { %994 = vst.msk [vmem:[%s1702_s19 + $0x30] sm:$0xff] %vm634_vm1, %v1430_v46  ;;  %1439 = vtanh.f32 %v863_v44 }
 0x1e4   : > { %1441 = vtanh.f32 %v858_v47  ;;  %v1306_v48 = vpop.f32.mrb[14].mxu1 }
 0x1e5   : > { %v1432_v49 = vpop.eup %1431  ;;  %v873_v50 = vadd.f32 %v1306_v48, %v1689_v10  ;;  %v867_v51 = vpop.f32.mrb[15].mxu1 }
 0x1e6   : > { %v1434_v52 = vpop.eup %1433  ;;  %997 = vst.msk [vmem:[%s1702_s19 + $0x48] sm:$0xff] %vm634_vm1, %v1432_v49  ;;  %v868_v53 = vadd.f32 %v1689_v10, %v867_v51 }
 0x1e7   : > { %996 = vst.msk [vmem:[%s1702_s19 + $0x40] sm:$0xff] %vm634_vm1, %v1434_v52  ;;  %1443 = vtanh.f32 %v873_v50 }
 0x1e8   : > { %1445 = vtanh.f32 %v868_v53  ;;  %v1309_v54 = vpop.f32.mrb[16].mxu1 }
 0x1e9   : > { %v1436_v55 = vpop.eup %1435  ;;  %v883_v56 = vadd.f32 %v1309_v54, %v1689_v10  ;;  %v877_v57 = vpop.f32.mrb[17].mxu1 }
 0x1ea   : > { %v1438_v58 = vpop.eup %1437  ;;  %999 = vst.msk [vmem:[%s1702_s19 + $0x58] sm:$0xff] %vm634_vm1, %v1436_v55  ;;  %v878_v59 = vadd.f32 %v1689_v10, %v877_v57 }
 0x1eb   : > { %998 = vst.msk [vmem:[%s1702_s19 + $0x50] sm:$0xff] %vm634_vm1, %v1438_v58  ;;  %1447 = vtanh.f32 %v883_v56 }
 0x1ec   : > { %1449 = vtanh.f32 %v878_v59  ;;  %v1312_v60 = vpop.f32.mrb[18].mxu1 }
 0x1ed   : > { %v1440_v61 = vpop.eup %1439  ;;  %v893_v62 = vadd.f32 %v1312_v60, %v1689_v10  ;;  %v887_v63 = vpop.f32.mrb[19].mxu1 }
 0x1ee   : > { %v1442_v0 = vpop.eup %1441  ;;  %1001 = vst.msk [vmem:[%s1702_s19 + $0x68] sm:$0xff] %vm634_vm1, %v1440_v61  ;;  %v888_v1 = vadd.f32 %v1689_v10, %v887_v63 }
 0x1ef   : > { %1000 = vst.msk [vmem:[%s1702_s19 + $0x60] sm:$0xff] %vm634_vm1, %v1442_v0  ;;  %1451 = vtanh.f32 %v893_v62 }
 0x1f0   : > { %1453 = vtanh.f32 %v888_v1  ;;  %v1315_v2 = vpop.f32.mrb[20].mxu1 }
 0x1f1   : > { %v1444_v3 = vpop.eup %1443  ;;  %v903_v4 = vadd.f32 %v1315_v2, %v1689_v10  ;;  %v897_v5 = vpop.f32.mrb[21].mxu1 }
 0x1f2   : > { %v1446_v6 = vpop.eup %1445  ;;  %1003 = vst.msk [vmem:[%s1702_s19 + $0x78] sm:$0xff] %vm634_vm1, %v1444_v3  ;;  %v898_v7 = vadd.f32 %v1689_v10, %v897_v5 }
 0x1f3   : > { %1002 = vst.msk [vmem:[%s1702_s19 + $0x70] sm:$0xff] %vm634_vm1, %v1446_v6  ;;  %1455 = vtanh.f32 %v903_v4 }
 0x1f4   : > { %1457 = vtanh.f32 %v898_v7  ;;  %v1318_v8 = vpop.f32.mrb[22].mxu1 }
 0x1f5   : > { %v1448_v41 = vpop.eup %1447  ;;  %v913_v9 = vadd.f32 %v1318_v8, %v1689_v10  ;;  %v907_v11 = vpop.f32.mrb[23].mxu1 }
 0x1f6   : > { %v1450_v12 = vpop.eup %1449  ;;  %1005 = vst.msk [vmem:[%s1702_s19 + $0x88] sm:$0xff] %vm634_vm1, %v1448_v41  ;;  %v908_v13 = vadd.f32 %v1689_v10, %v907_v11 }
 0x1f7   : > { %1004 = vst.msk [vmem:[%s1702_s19 + $0x80] sm:$0xff] %vm634_vm1, %v1450_v12  ;;  %1459 = vtanh.f32 %v913_v9 }
 0x1f8   : > { %1461 = vtanh.f32 %v908_v13  ;;  %v1321_v14 = vpop.f32.mrb[24].mxu1 }
 0x1f9   : > { %v1452_v15 = vpop.eup %1451  ;;  %v923_v16 = vadd.f32 %v1321_v14, %v1689_v10  ;;  %v917_v17 = vpop.f32.mrb[25].mxu1 }
 0x1fa   : > { %v1454_v18 = vpop.eup %1453  ;;  %1007 = vst.msk [vmem:[%s1702_s19 + $0x98] sm:$0xff] %vm634_vm1, %v1452_v15  ;;  %v918_v19 = vadd.f32 %v1689_v10, %v917_v17 }
 0x1fb   : > { %1006 = vst.msk [vmem:[%s1702_s19 + $0x90] sm:$0xff] %vm634_vm1, %v1454_v18  ;;  %1463 = vtanh.f32 %v923_v16 }
 0x1fc   : > { %1465 = vtanh.f32 %v918_v19  ;;  %v1324_v20 = vpop.f32.mrb[26].mxu1 }
 0x1fd   : > { %v1456_v21 = vpop.eup %1455  ;;  %v933_v22 = vadd.f32 %v1324_v20, %v1689_v10  ;;  %v927_v23 = vpop.f32.mrb[27].mxu1 }
 0x1fe   : > { %v1458_v24 = vpop.eup %1457  ;;  %1009 = vst.msk [vmem:[%s1702_s19 + $0xa8] sm:$0xff] %vm634_vm1, %v1456_v21  ;;  %v928_v25 = vadd.f32 %v1689_v10, %v927_v23 }
 0x1ff   : > { %1008 = vst.msk [vmem:[%s1702_s19 + $0xa0] sm:$0xff] %vm634_vm1, %v1458_v24  ;;  %1467 = vtanh.f32 %v933_v22 }
 0x200   : > { %1469 = vtanh.f32 %v928_v25  ;;  %v1327_v26 = vpop.f32.mrb[28].mxu1 }
 0x201   : > { %v1460_v27 = vpop.eup %1459  ;;  %v943_v28 = vadd.f32 %v1327_v26, %v1689_v10  ;;  %v937_v29 = vpop.f32.mrb[29].mxu1 }
 0x202   : > { %v1462_v30 = vpop.eup %1461  ;;  %1011 = vst.msk [vmem:[%s1702_s19 + $0xb8] sm:$0xff] %vm634_vm1, %v1460_v27  ;;  %v938_v31 = vadd.f32 %v1689_v10, %v937_v29 }
 0x203   : > { %1010 = vst.msk [vmem:[%s1702_s19 + $0xb0] sm:$0xff] %vm634_vm1, %v1462_v30  ;;  %1471 = vtanh.f32 %v943_v28 }
 0x204   : > { %1473 = vtanh.f32 %v938_v31  ;;  %v1330_v32 = vpop.f32.mrb[30].mxu1 }
 0x205   : > { %v1464_v33 = vpop.eup %1463  ;;  %v953_v34 = vadd.f32 %v1330_v32, %v1689_v10  ;;  %v947_v35 = vpop.f32.mrb[31].mxu1 }
 0x206   : > { %v1466_v36 = vpop.eup %1465  ;;  %1013 = vst.msk [vmem:[%s1702_s19 + $0xc8] sm:$0xff] %vm634_vm1, %v1464_v33  ;;  %v948_v37 = vadd.f32 %v1689_v10, %v947_v35 }
 0x207   : > { %1012 = vst.msk [vmem:[%s1702_s19 + $0xc0] sm:$0xff] %vm634_vm1, %v1466_v36  ;;  %1475 = vtanh.f32 %v953_v34 }
 0x208   : > { %1477 = vtanh.f32 %v948_v37 }
 0x209   : > { %v1468_v38 = vpop.eup %1467 }
 0x20a   : > { %v1470_v39 = vpop.eup %1469  ;;  %1015 = vst.msk [vmem:[%s1702_s19 + $0xd8] sm:$0xff] %vm634_vm1, %v1468_v38 }
 0x20b   : > { %1014 = vst.msk [vmem:[%s1702_s19 + $0xd0] sm:$0xff] %vm634_vm1, %v1470_v39 }
 0x20d   : > { %v1472_v40 = vpop.eup %1471 }
 0x20e   : > { %v1474_v42 = vpop.eup %1473  ;;  %1017 = vst.msk [vmem:[%s1702_s19 + $0xe8] sm:$0xff] %vm634_vm1, %v1472_v40 }
 0x20f   : > { %1016 = vst.msk [vmem:[%s1702_s19 + $0xe0] sm:$0xff] %vm634_vm1, %v1474_v42 }
 0x211   : > { %v1476_v43 = vpop.eup %1475 }
 0x212   : > { %v1478_v44 = vpop.eup %1477  ;;  %1019 = vst.msk [vmem:[%s1702_s19 + $0xf8] sm:$0xff] %vm634_vm1, %v1476_v43 }
 0x213   : > { %1018 = vst.msk [vmem:[%s1702_s19 + $0xf0] sm:$0xff] %vm634_vm1, %v1478_v44 }
 0x214 PF: > { %s15_s18 = sadd.s32 1, %s1485_s18  }
 0x215   : > { %p12_p4 = scmp.ge.s32.totalorder %s15_s18, 4  }
 0x217   :  { %14 = sbr.rel (!%p12_p4) target bundleno = 1 (0x1), region = 70 }

</bundles_post_ra>
